<compile_context>
chip_gen: v7x
topology: tpu7x:2x2x1
jax: 0.10.0
libtpu: 0.0.40
codegen_flags: <defaults>
</compile_context>

<pallas_src>
import functools

import jax
import jax.numpy as jnp
from jax.experimental import pallas as pl
from jax.experimental.pallas import tpu as pltpu


def _tree_attention_kernel(hid_ref, enc_ref, mask_ref,
                           whT_ref, weT_ref, ba_ref, ws_ref,
                           out_ref, *, chunk_s, approx_recip):
    """One batch block of TB rows.

    hid_ref  : [TB, H]        decoder hidden states (compute dtype)
    enc_ref  : [S, TB, D_in]  encoder outputs, native seq-major layout (compute dtype)
    mask_ref : [S, TB] f32    >0 means masked (already transposed in wrapper)
    whT_ref  : [H, H]         W_attn[:, :H]^T   (hidden part, compute dtype)
    weT_ref  : [D_in, H]      W_attn[:, H:]^T   (encoder part, compute dtype)
    ba_ref   : [1, H] f32     attn bias
    ws_ref   : [1, H] f32     score weight row
    out_ref  : [S, TB] f32    softmax attention weights (lane-dense: batch on lanes)
    """
    s_len, tb, d_in = enc_ref.shape
    h = whT_ref.shape[0]

    # Hidden projection: one [TB,H]@[H,H] MXU matmul, hoisted (per block, not per s).
    hid_proj = jnp.dot(hid_ref[...], whT_ref[...],
                       preferred_element_type=jnp.float32) + ba_ref[...]      # [TB, H] f32
    hid_proj3 = hid_proj.reshape(1, tb, h)                                    # broadcast over s
    ws_row = ws_ref[...].reshape(1, 1, h)                                     # [1, 1, H] f32

    def energy_chunk(c0, cs):
        # Fold (cs, TB) rows into one big MXU M-dim (TB is sublane-aligned,
        # so the fold/unfold reshapes are layout no-ops).
        x = enc_ref[pl.ds(c0, cs), :, :]                                      # [cs, TB, D_in]
        f = jnp.dot(x.reshape(cs * tb, d_in), weT_ref[...],
                    preferred_element_type=jnp.float32)                       # [cs*TB, H] f32
        f = jnp.tanh(f.reshape(cs, tb, h) + hid_proj3)                        # [cs, TB, H] f32
        # Score contraction on VPU + lane reduce (XLU) - keeps the MXU free
        # and avoids an M=1 matmul.
        return jnp.sum(f * ws_row, axis=-1)                                   # [cs, TB] f32

    # Static (trace-time) chunking over S bounds the f32 feat intermediate.
    n_chunks = -(-s_len // chunk_s)
    if n_chunks == 1:
        energy = energy_chunk(0, s_len)
    else:
        for c0 in range(0, s_len, chunk_s):
            cs = min(chunk_s, s_len - c0)
            out_ref[pl.ds(c0, cs), :] = energy_chunk(c0, cs)                  # stage raw energies
        energy = out_ref[...]                                                 # [S, TB] f32

    # Masked, numerically stable softmax over S (sublane axis); batch stays on
    # the lane axis so the final store is lane-dense.
    energy = jnp.where(mask_ref[...] > 0.0, jnp.float32(-1.0e12), energy)
    m = jnp.max(energy, axis=0, keepdims=True)
    p = jnp.exp(energy - m)
    inv = pl.reciprocal(jnp.sum(p, axis=0, keepdims=True), approx=approx_recip)
    out_ref[...] = (p * inv).astype(out_ref.dtype)


def tree_attention(hidden, encoder_outputs, seq_mask, params, *,
                   block_b=None, compute_dtype=jnp.float32, approx_recip=None):
    """hidden: [1,B,H], encoder_outputs: [S,B,D_in] (native layout),
    seq_mask: [B,S] (1 = masked).  Returns attention weights [B, 1, S] (f32)."""
    W_attn, b_attn, W_score, _b_score = params   # b_score cancels under softmax -> dropped
    S, B, D_in = encoder_outputs.shape
    H = hidden.shape[-1]

    elem = jnp.dtype(compute_dtype).itemsize
    sub = 8 if elem >= 4 else 16                   # sublane tile (f32: 8, bf16: 16)

    # ---- batch tiling ------------------------------------------------------
    if block_b is None:
        budget = 4 * 1024 * 1024                   # per enc tile buffer (x2 double-buffered)
        cand = budget // max(1, S * D_in * elem)   # batch rows that fit
        if B >= 256:                               # v7x: keep >=2 'parallel' blocks (2 TCs)
            cand = min(cand, -(-B // 2))
        cand = (cand // 128) * 128
        block_b = B if (B <= 128 or cand >= B) else max(128, cand)
    elif block_b < B:
        # Multi-block tiles must be lane-dense (last dim of mask/out blocks).
        block_b = max(128, (block_b // 128) * 128)

    if block_b >= B:
        block_b = -(-B // sub) * sub               # single block, sublane-aligned
        num_blocks = 1
    else:
        num_blocks = -(-B // block_b)
    b_pad = num_blocks * block_b

    # ---- layout plumbing (no transpose of encoder_outputs, no f32 round-trip)
    hid = hidden.reshape(B, H).astype(compute_dtype)           # [B, H]
    enc = encoder_outputs.astype(compute_dtype)                # [S, B, D_in]
    mask_t = seq_mask.reshape(B, S).astype(jnp.float32).T      # [S, B] (tiny)

    pad = b_pad - B
    if pad:
        hid = jnp.pad(hid, ((0, pad), (0, 0)))
        enc = jnp.pad(enc, ((0, 0), (0, pad), (0, 0)))
        mask_t = jnp.pad(mask_t, ((0, 0), (0, pad)), constant_values=1.0)

    # Split the concat-Linear: concat order is (hidden, encoder_outputs).
    whT = jnp.asarray(W_attn[:, :H].T, compute_dtype)          # [H, H]
    weT = jnp.asarray(W_attn[:, H:].T, compute_dtype)          # [D_in, H]
    ba = jnp.asarray(b_attn, jnp.float32).reshape(1, H)        # [1, H]
    ws = jnp.asarray(W_score, jnp.float32).reshape(1, H)       # [1, H]

    # In-kernel S-chunk size: keep the [cs*TB, *] intermediates ~<= 0.5 MiB.
    row_bytes = block_b * max(H * 4, D_in * elem)
    chunk_s = ((512 * 1024) // max(1, row_bytes)) // 8 * 8
    chunk_s = min(S, max(8, chunk_s))

    if approx_recip is None:
        # Exact reciprocal when strict f32 parity is wanted; EUP fast path otherwise.
        approx_recip = jnp.dtype(compute_dtype) != jnp.dtype(jnp.float32)

    kernel = functools.partial(_tree_attention_kernel,
                               chunk_s=chunk_s, approx_recip=approx_recip)

    out = pl.pallas_call(
        kernel,
        out_shape=jax.ShapeDtypeStruct((S, b_pad), jnp.float32),
        grid_spec=pltpu.PrefetchScalarGridSpec(
            num_scalar_prefetch=0,
            grid=(num_blocks,),
            in_specs=[
                pl.BlockSpec((block_b, H), lambda b: (b, 0)),           # hidden
                pl.BlockSpec((S, block_b, D_in), lambda b: (0, b, 0)),  # encoder (native)
                pl.BlockSpec((S, block_b), lambda b: (0, b)),           # mask^T
                # Weights: constant block index -> DMA'd once, not re-fetched.
                pl.BlockSpec((H, H), lambda b: (0, 0)),                 # Wh^T
                pl.BlockSpec((D_in, H), lambda b: (0, 0)),              # We^T
                pl.BlockSpec((1, H), lambda b: (0, 0)),                 # b_attn
                pl.BlockSpec((1, H), lambda b: (0, 0)),                 # w_score
            ],
            out_specs=pl.BlockSpec((S, block_b), lambda b: (0, b)),     # lane-dense [S, TB]
        ),
        compiler_params=pltpu.CompilerParams(
            dimension_semantics=("parallel",),
            vmem_limit_bytes=32 * 1024 * 1024),
    )(hid, enc, mask_t, whT, weT, ba, ws)

    # Tiny wrapper-side transpose (B*S*4 bytes) back to the PyTorch layout.
    return out[:, :B].T.reshape(B, 1, S)


def _reference(hidden, encoder_outputs, seq_mask, params):
    """Pure-JAX reference mirroring the PyTorch forward."""
    W_attn, b_attn, W_score, b_score = params
    S, B, D_in = encoder_outputs.shape
    H = hidden.shape[-1]
    hid_rep = jnp.broadcast_to(hidden, (S, B, H))
    energy_in = jnp.concatenate([hid_rep, encoder_outputs], axis=2).reshape(-1, H + D_in)
    score_feature = jnp.tanh(energy_in @ W_attn.T + b_attn)
    attn = (score_feature @ W_score.T + b_score)[:, 0]
    attn = attn.reshape(S, B).T                              # [B, S]
    attn = jnp.where(seq_mask.astype(bool), -1.0e12, attn)
    attn = jax.nn.softmax(attn, axis=1)
    return attn[:, None, :]                                  # [B, 1, S]


if __name__ == "__main__":
    hidden_size = 32   # H  (decoder hidden / attn output size)
    input_size = 48    # D_in (encoder output feature size)

    key = jax.random.PRNGKey(0)
    kp, kin1, kin2 = jax.random.split(key, 3)
    k1, k2, k3, k4 = jax.random.split(kp, 4)

    fan_attn = hidden_size + input_size
    lim_a = 1.0 / jnp.sqrt(fan_attn)
    lim_s = 1.0 / jnp.sqrt(hidden_size)
    W_attn = jax.random.uniform(k1, (hidden_size, fan_attn), jnp.float32, -lim_a, lim_a)
    b_attn = jax.random.uniform(k2, (hidden_size,), jnp.float32, -lim_a, lim_a)
    W_score = jax.random.uniform(k3, (1, hidden_size), jnp.float32, -lim_s, lim_s)
    b_score = jax.random.uniform(k4, (1,), jnp.float32, -lim_s, lim_s)
    params = (W_attn, b_attn, W_score, b_score)

    def make_inputs(k, batch, seq):
        ka, kb, kc = jax.random.split(k, 3)
        h = jax.random.normal(ka, (1, batch, hidden_size), jnp.float32)
        e = jax.random.normal(kb, (seq, batch, input_size), jnp.float32)
        m = (jax.random.uniform(kc, (batch, seq)) > 0.7).astype(jnp.int32)
        m = m.at[:, 0].set(0)          # ensure no row is fully masked
        return h, e, m

    # 1) Small case: whole batch in a single grid step, f32 compute, fused matmul.
    hidden, enc, mask = make_inputs(kin1, 2, 8)
    out = jax.block_until_ready(tree_attention(hidden, enc, mask, params))
    ref = _reference(hidden, enc, mask, params)
    assert out.shape == (2, 1, 8), out.shape
    assert jnp.allclose(out, ref, atol=1e-5, rtol=1e-5), (
        f"max abs err {float(jnp.max(jnp.abs(out - ref)))}")

    # 2) bf16 MXU operand path (enc DMA'd as bf16); accumulation & softmax stay f32.
    out_bf = jax.block_until_ready(
        tree_attention(hidden, enc, mask, params, compute_dtype=jnp.bfloat16))
    assert jnp.allclose(out_bf, ref, atol=2e-2, rtol=2e-2), (
        f"max abs err (bf16) {float(jnp.max(jnp.abs(out_bf - ref)))}")

    # 3) Multi-block path (block_b=128, 3 blocks, padded batch) + chunked-S path.
    hidden2, enc2, mask2 = make_inputs(kin2, 260, 40)
    out2 = jax.block_until_ready(tree_attention(hidden2, enc2, mask2, params))
    ref2 = _reference(hidden2, enc2, mask2, params)
    assert out2.shape == (260, 1, 40), out2.shape
    assert jnp.allclose(out2, ref2, atol=1e-5, rtol=1e-5), (
        f"max abs err (tiled) {float(jnp.max(jnp.abs(out2 - ref2)))}")

    print("KERNEL_OK")
</pallas_src>

<mosaic_0001>
module attributes {stable_mosaic.version = 11 : i64} {
  func.func @_tree_attention_kernel(%arg0: i32, %arg1: memref<8x32xf32, #tpu.memory_space<vmem>>, %arg2: memref<8x8x48xf32, #tpu.memory_space<vmem>>, %arg3: memref<8x8xf32, #tpu.memory_space<vmem>>, %arg4: memref<32x32xf32, #tpu.memory_space<vmem>>, %arg5: memref<48x32xf32, #tpu.memory_space<vmem>>, %arg6: memref<1x32xf32, #tpu.memory_space<vmem>>, %arg7: memref<1x32xf32, #tpu.memory_space<vmem>>, %arg8: memref<8x8xf32, #tpu.memory_space<vmem>>) attributes {dimension_semantics = [#tpu.dimension_semantics<parallel>], iteration_bounds = array<i64: 1>, scalar_prefetch = 0 : i64, scratch_operands = 0 : i64, tpu.core_type = #tpu.core_type<tc>, window_params = [{transform_indices = @transform_0, window_bounds = array<i64: 8, 32>}, {transform_indices = @transform_1, window_bounds = array<i64: 8, 8, 48>}, {transform_indices = @transform_2, window_bounds = array<i64: 8, 8>}, {pipeline_mode = #tpu.pipeline_mode<synchronous>, transform_indices = @transform_3, window_bounds = array<i64: 32, 32>}, {pipeline_mode = #tpu.pipeline_mode<synchronous>, transform_indices = @transform_4, window_bounds = array<i64: 48, 32>}, {pipeline_mode = #tpu.pipeline_mode<synchronous>, transform_indices = @transform_5, window_bounds = array<i64: 1, 32>}, {pipeline_mode = #tpu.pipeline_mode<synchronous>, transform_indices = @transform_6, window_bounds = array<i64: 1, 32>}, {transform_indices = @transform_7, window_bounds = array<i64: 8, 8>}]} {
    %c0 = arith.constant 0 : index
    %c0_0 = arith.constant 0 : index
    %0 = vector.load %arg1[%c0, %c0_0] : memref<8x32xf32, #tpu.memory_space<vmem>>, vector<8x32xf32>
    %c0_1 = arith.constant 0 : index
    %c0_2 = arith.constant 0 : index
    %1 = vector.load %arg4[%c0_1, %c0_2] : memref<32x32xf32, #tpu.memory_space<vmem>>, vector<32x32xf32>
    %cst = arith.constant dense<0.000000e+00> : vector<8x32xf32>
    %2 = tpu.matmul %0, %1, %cst {dimension_numbers = #tpu.dot_dimension_numbers<[1], [0], [0], [1], [0, 0, 1, 1], [], []>} : vector<8x32xf32>, vector<32x32xf32>, vector<8x32xf32> -> vector<8x32xf32>
    %c0_3 = arith.constant 0 : index
    %c0_4 = arith.constant 0 : index
    %3 = vector.load %arg6[%c0_3, %c0_4] : memref<1x32xf32, #tpu.memory_space<vmem>>, vector<1x32xf32>
    %4 = vector.broadcast %3 : vector<1x32xf32> to vector<8x32xf32>
    %5 = arith.addf %2, %4 : vector<8x32xf32>
    %6 = vector.shape_cast %5 : vector<8x32xf32> to vector<1x8x32xf32>
    %c0_5 = arith.constant 0 : index
    %c0_6 = arith.constant 0 : index
    %7 = vector.load %arg7[%c0_5, %c0_6] : memref<1x32xf32, #tpu.memory_space<vmem>>, vector<1x32xf32>
    %8 = vector.shape_cast %7 : vector<1x32xf32> to vector<1x1x32xf32>
    %c0_7 = arith.constant 0 : index
    %c0_8 = arith.constant 0 : index
    %c0_9 = arith.constant 0 : index
    %9 = vector.load %arg2[%c0_7, %c0_8, %c0_9] : memref<8x8x48xf32, #tpu.memory_space<vmem>>, vector<8x8x48xf32>
    %10 = vector.shape_cast %9 : vector<8x8x48xf32> to vector<64x48xf32>
    %c0_10 = arith.constant 0 : index
    %c0_11 = arith.constant 0 : index
    %11 = vector.load %arg5[%c0_10, %c0_11] : memref<48x32xf32, #tpu.memory_space<vmem>>, vector<48x32xf32>
    %cst_12 = arith.constant dense<0.000000e+00> : vector<64x32xf32>
    %12 = tpu.matmul %10, %11, %cst_12 {dimension_numbers = #tpu.dot_dimension_numbers<[1], [0], [0], [1], [0, 0, 1, 1], [], []>} : vector<64x48xf32>, vector<48x32xf32>, vector<64x32xf32> -> vector<64x32xf32>
    %13 = vector.shape_cast %12 : vector<64x32xf32> to vector<8x8x32xf32>
    %14 = vector.broadcast %6 : vector<1x8x32xf32> to vector<8x8x32xf32>
    %15 = arith.addf %13, %14 : vector<8x8x32xf32>
    %16 = math.tanh %15 : vector<8x8x32xf32>
    %17 = vector.broadcast %8 : vector<1x1x32xf32> to vector<8x8x32xf32>
    %18 = arith.mulf %16, %17 : vector<8x8x32xf32>
    %cst_13 = arith.constant dense<0.000000e+00> : vector<8x8xf32>
    %19 = vector.multi_reduction <add>, %18, %cst_13 [2] : vector<8x8x32xf32> to vector<8x8xf32>
    %c0_14 = arith.constant 0 : index
    %c0_15 = arith.constant 0 : index
    %20 = vector.load %arg3[%c0_14, %c0_15] : memref<8x8xf32, #tpu.memory_space<vmem>>, vector<8x8xf32>
    %cst_16 = arith.constant 0.000000e+00 : f32
    %21 = vector.broadcast %cst_16 : f32 to vector<8x8xf32>
    %22 = arith.cmpf ogt, %20, %21 : vector<8x8xf32>
    %cst_17 = arith.constant -9.99999995E+11 : f32
    %23 = vector.broadcast %cst_17 : f32 to vector<8x8xf32>
    %24 = arith.select %22, %23, %19 : vector<8x8xi1>, vector<8x8xf32>
    %cst_18 = arith.constant dense<0xFF800000> : vector<8xf32>
    %25 = vector.multi_reduction <maximumf>, %24, %cst_18 [0] : vector<8x8xf32> to vector<8xf32>
    %26 = vector.shape_cast %25 : vector<8xf32> to vector<1x8xf32>
    %27 = vector.broadcast %26 : vector<1x8xf32> to vector<8x8xf32>
    %28 = arith.subf %24, %27 : vector<8x8xf32>
    %29 = math.exp %28 : vector<8x8xf32>
    %cst_19 = arith.constant dense<0.000000e+00> : vector<8xf32>
    %30 = vector.multi_reduction <add>, %29, %cst_19 [0] : vector<8x8xf32> to vector<8xf32>
    %31 = vector.shape_cast %30 : vector<8xf32> to vector<1x8xf32>
    %32 = tpu.reciprocal %31 : vector<1x8xf32> -> vector<1x8xf32>
    %33 = vector.broadcast %32 : vector<1x8xf32> to vector<8x8xf32>
    %34 = arith.mulf %29, %33 : vector<8x8xf32>
    %c0_20 = arith.constant 0 : index
    %c0_21 = arith.constant 0 : index
    %35 = vector.load %arg8[%c0_20, %c0_21] : memref<8x8xf32, #tpu.memory_space<vmem>>, vector<8x8xf32>
    tpu.vector_store %arg8[%c0_20, %c0_21], %34 {strides = array<i32>} : memref<8x8xf32, #tpu.memory_space<vmem>>, vector<8x8xf32>,
    return
  }
  func.func @transform_0(%arg0: i32) -> (i32, i32) {
    %c0_i32 = arith.constant 0 : i32
    %c0_i32_0 = arith.constant 0 : i32
    return %arg0, %c0_i32 : i32, i32
  }
  func.func @transform_1(%arg0: i32) -> (i32, i32, i32) {
    %c0_i32 = arith.constant 0 : i32
    %c0_i32_0 = arith.constant 0 : i32
    %c0_i32_1 = arith.constant 0 : i32
    return %c0_i32, %arg0, %c0_i32_0 : i32, i32, i32
  }
  func.func @transform_2(%arg0: i32) -> (i32, i32) {
    %c0_i32 = arith.constant 0 : i32
    %c0_i32_0 = arith.constant 0 : i32
    return %c0_i32, %arg0 : i32, i32
  }
  func.func @transform_3(%arg0: i32) -> (i32, i32) {
    %c0_i32 = arith.constant 0 : i32
    %c0_i32_0 = arith.constant 0 : i32
    %c0_i32_1 = arith.constant 0 : i32
    return %c0_i32, %c0_i32_0 : i32, i32
  }
  func.func @transform_4(%arg0: i32) -> (i32, i32) {
    %c0_i32 = arith.constant 0 : i32
    %c0_i32_0 = arith.constant 0 : i32
    %c0_i32_1 = arith.constant 0 : i32
    return %c0_i32, %c0_i32_0 : i32, i32
  }
  func.func @transform_5(%arg0: i32) -> (i32, i32) {
    %c0_i32 = arith.constant 0 : i32
    %c0_i32_0 = arith.constant 0 : i32
    %c0_i32_1 = arith.constant 0 : i32
    return %c0_i32, %c0_i32_0 : i32, i32
  }
  func.func @transform_6(%arg0: i32) -> (i32, i32) {
    %c0_i32 = arith.constant 0 : i32
    %c0_i32_0 = arith.constant 0 : i32
    %c0_i32_1 = arith.constant 0 : i32
    return %c0_i32, %c0_i32_0 : i32, i32
  }
  func.func @transform_7(%arg0: i32) -> (i32, i32) {
    %c0_i32 = arith.constant 0 : i32
    %c0_i32_0 = arith.constant 0 : i32
    return %c0_i32, %arg0 : i32, i32
  }
}

</mosaic_0001>

<bundles_post_ra>
// kernel: tpu_custom_call.1
= control target key start
LH: loop header
LB: loop body
LE: loop exit
PB: predicated region body
PF: predicated region fallthrough
CT: control target
= control target key end

     0   :  { %12 = vsyncpa [#allocation3], 0  ;;  %s731_s0 = inlined_call_operand.vmem [shape: f32[8,32], index: 0, kind: input, shape index: {}]   ;;  %s732_s1 = inlined_call_operand.vmem [shape: f32[8,8,48], index: 1, kind: input, shape index: {}]   ;;  %s733_s2 = inlined_call_operand.vmem [shape: f32[8,8], index: 2, kind: input, shape index: {}]   ;;  %s734_s3 = inlined_call_operand.hbm [shape: f32[32,32], index: 3, kind: input, shape index: {}]   ;;  %s735_s4 = inlined_call_operand.vmem [shape: f32[48,32], index: 4, kind: input, shape index: {}]   ;;  %s736_s5 = inlined_call_operand.vmem [shape: f32[1,32], index: 5, kind: input, shape index: {}]   ;;  %s737_s6 = inlined_call_operand.vmem [shape: f32[1,32], index: 6, kind: input, shape index: {}]   ;;  %s738_s7 = inlined_call_operand.hbm [shape: f32[8,8], index: 7, kind: output, shape index: {}]  }
   0x1   :  { %13 = vsyncpa [#allocation4], 0  ;;  %s586_s24 = smov [#allocation2]   ;;  %s538_s28 = scalar_lea.hbm %s734_s3, 512 }
   0x2   :  { %s25_s25 = sshll.u32 %s586_s24, 4  ;;  %p539_p0 = scmp.ne.s32.totalorder %s734_s3, %s538_s28  ;;  %s26_s25 = int_to_ptr.vmem [resolvable:$true] %s25_s25 }
   0x3   :  { %p542_p1 = scmp.lt.u32.totalorder %s538_s28, %s734_s3 }
   0x5   :  { %p544_p2 = pnand %p542_p1, %p539_p0 }
   0x7   :  { %547 = shalt.err (!%p544_p2)
}
   0x8   :  { %s548_s10 = scalar_lea.vmem %s26_s25, 512  ;;  %p553_p4 = scmp.lt.s32.totalorder %s26_s25, %s26_s25 }
   0x9   :  { %p549_p3 = scmp.ne.s32.totalorder %s26_s25, %s548_s10  ;;  %p554_p5 = scmp.lt.s32.totalorder %s548_s10, %s548_s10 }
   0xb   :  { %p555_p6 = por %p554_p5, %p553_p4 }
   0xd   :  { %p556_p7 = pnand %p555_p6, %p549_p3 }
   0xf   :  { %559 = shalt.err (!%p556_p7)
}
  0x10   :  { %s587_s11 = smov 128   ;;  %s588_s12 = smov 8  }
  0x11   :  { %31 = dma.hbm_to_vmem [thread:$0]  %s734_s3, 512, %s26_s25, [#allocation3], %s587_s11, %s587_s11, %s588_s12  }
  0x12   :  { %582 = dma.done.wait [#allocation3], 512  }
  0x13   :  { %583 = vsyncadd [#allocation3], 4294966784  ;;  %v589_v0 = vmov 0.0|0.0   ;;  %vm590_vm0 = vmmov 0   ;;  %v591_v1 = vmov 0.0   ;;  %v42_v2 = vld [vmem:[#allocation2] sm:$0xff] }
  0x14   :  { %487 = vmatprep.subr.bf16.mxu0 %v589_v0  ;;  %460 = vmatprep.mubr.msk.f32.mxu0 %vm590_vm0, %v591_v1  ;;  %v43_v3 = vld [vmem:[#allocation2 + $0x8] sm:$0xff]  ;;  %v136_v4 = vld [vmem:[%s735_s4] sm:$0xff]  ;;  %v44_v7 = vld [vmem:[#allocation2 + $0x10] sm:$0xff]  ;;  %vm142_vm1 = vcmask 392192   ;;  %vm53_vm2 = vcmask 261120   ;;  %vm370_vm3 = vcmask 1041409  }
  0x15   :  { %v488_v5 = vpack.c.bf16 %v43_v3, %v42_v2  ;;  %v137_v6 = vld [vmem:[%s735_s4 + $0x8] sm:$0xff]  ;;  %v45_v8 = vld [vmem:[#allocation2 + $0x18] sm:$0xff]  ;;  %v138_v10 = vld [vmem:[%s735_s4 + $0x10] sm:$0xff]  ;;  %vm372_vm4 = vcmask 1042434   ;;  %vm374_vm5 = vcmask 1043459   ;;  %vm376_vm6 = vcmask 1044484  }
  0x16   :  { %v493_v9 = vpack.c.bf16 %v137_v6, %v136_v4  ;;  %v139_v11 = vld [vmem:[%s735_s4 + $0x18] sm:$0xff]  ;;  %v491_v12 = vpack.c.bf16 %v45_v8, %v44_v7  ;;  %v140_v14 = vld [vmem:[%s735_s4 + $0x20] sm:$0xff]  ;;  %v141_v15 = vld [vmem:[%s735_s4 + $0x28] sm:$0xff]  ;;  %v336_v8 = vlaneseq  ;;  %vm378_vm7 = vcmask 1045509  }
  0x17   :  { %489 = vmatpush3.bf16.msra.mxu0 %v488_v5  ;;  %v497_v13 = vpack.c.bf16 %v139_v11, %v138_v10  ;;  %v130_v16 = vld [vmem:[%s732_s1 + $0x10] sm:$0xff]  ;;  %v501_v17 = vpack.c.bf16 %v141_v15, %v140_v14  ;;  %v41_v18 = vld [vmem:[%s731_s0] sm:$0xff]  ;;  %v131_v20 = vld [vmem:[%s732_s1 + $0x18] sm:$0xff]  ;;  %vm380_vm8 = vcmask 1046534   ;;  %vm382_vm9 = vcmask 1047559  }
  0x18   :  { %505 = vmatprep.subr.bf16.mxu1 %v493_v9  ;;  %490 = vmatprep.subr.bf16.mxu0 %v589_v0  ;;  %v128_v19 = vld [vmem:[%s732_s1] sm:$0xff]  ;;  %v133_v22 = vld [vmem:[%s732_s1 + $0x28] sm:$0xff]  ;;  %v134_v23 = vld [vmem:[%s732_s1 + $0x30] sm:$0xff]  ;;  %v339_v10 = vshrl.u32 %v336_v8, 7  ;;  %vm386_vm11 = vcmask 64512  }
  0x19   :  { %508 = vmatpush3.bf16.msra.mxu1 %v493_v9  ;;  %478 = vmatprep.mubr.msk.f32.mxu1 %vm142_vm1, %v130_v16  ;;  %v132_v21 = vld [vmem:[%s732_s1 + $0x20] sm:$0xff]  ;;  %v129_v24 = vld [vmem:[%s732_s1 + $0x8] sm:$0xff]  ;;  %v135_v25 = vld [vmem:[%s732_s1 + $0x38] sm:$0xff] }
  0x1a   :  { %506 = vmatprep.subr.bf16.mxu1 %v497_v13  ;;  %v422_v28 = vld [vmem:[%s736_s5] ss:$0 sm:$0xff] }
  0x1b   :  { %492 = vmatpush3.bf16.msra.mxu0 %v491_v12  ;;  %v432_v46 = vld [vmem:[%s737_s6] ss:$0 sm:$0xff] }
  0x1c   :  { %494 = vmatprep.subr.bf16.mxu0 %v493_v9 }
  0x1d   :  { %509 = vmatpush3.bf16.msra.mxu1 %v497_v13 }
  0x1e   :  { %461 = vmatmul.mubr.msk.f32.vlgmr.msra.gmra.mrb[0].mxu0 %vm53_vm2, %v41_v18  ;;  %507 = vmatprep.subr.bf16.mxu1 %v501_v17 }
  0x1f   :  { %496 = vmatpush3.bf16.msra.mxu0 %v493_v9  ;;  %475 = vmatprep.mubr.msk.f32.mxu0 %vm142_vm1, %v128_v19  ;;  %v337_v9 = vand.u32 127, %v336_v8 }
  0x20   :  { %498 = vmatprep.subr.bf16.mxu0 %v497_v13 }
  0x21   :  { %510 = vmatpush3.bf16.msra.mxu1 %v501_v17 }
  0x23   :  { %500 = vmatpush3.bf16.msra.mxu0 %v497_v13  ;;  %v340_v13 = vsub.s32 %v337_v9, %v339_v10 }
  0x24   :  { %479 = vmatmul.mubr.msk.f32.vlgmr.msra.gmra.mrb[0].mxu1 %vm142_vm1, %v131_v20  ;;  %502 = vmatprep.subr.bf16.mxu0 %v501_v17 }
  0x25   :  { %481 = vmatprep.mubr.msk.f32.mxu1 %vm142_vm1, %v132_v21 }
  0x27   :  { %504 = vmatpush3.bf16.msra.mxu0 %v501_v17 }
  0x28   :  { %482 = vmatmul.mubr.msk.f32.gmra.mrb[2].mxu1 %vm142_vm1, %v133_v22 }
  0x29   :  { %484 = vmatprep.mubr.msk.f32.mxu1 %vm142_vm1, %v134_v23 }
  0x2a   :  { %476 = vmatmul.mubr.msk.f32.vlgmr.msra.gmra.mrb[2].mxu0 %vm142_vm1, %v129_v24 }
  0x2c   :  { %485 = vmatmul.mubr.msk.f32.gmra.mrb[4].mxu1 %vm142_vm1, %v135_v25 }
  0xf1   :  { %v123_v26 = vpop.f32.mrb[0].mxu0 }
  0xf2   :  { %v462_v27 = vpop.f32.mrb[1].mxu0  ;;  %v124_v29 = vadd.f32 %v422_v28, %v123_v26 }
  0xf3   :  { %v326_v27 = vld [vmem:[%s733_s2] sm:$0xff]  ;;  %s592_s2 = smov [#allocation5]  }
  0xf4   :  { %vm327_vm10 = vcmp.gt.f32.partialorder %v326_v27, 0.0  ;;  %s413_s21 = sshll.u32 %s592_s2, 4  ;;  %s414_s21 = int_to_ptr.vmem [resolvable:$true] %s413_s21 }
  0xf5   :  { %s560_s22 = scalar_lea.vmem %s414_s21, 128  ;;  %p565_p9 = scmp.lt.s32.totalorder %s414_s21, %s414_s21 }
  0xf6   :  { %p561_p8 = scmp.ne.s32.totalorder %s414_s21, %s560_s22  ;;  %p566_p10 = scmp.lt.s32.totalorder %s560_s22, %s560_s22 }
  0xf7   :  { %v480_v30 = vpop.f32.mrb[0].mxu1 }
  0xf8   :  { %v275_v31 = vadd.f32 %v480_v30, %v124_v29  ;;  %v243_v32 = vpop.f32.mrb[1].mxu1  ;;  %p567_p11 = por %p566_p10, %p565_p9 }
  0xf9   :  { %v274_v33 = vadd.f32 %v243_v32, %v124_v29 }
  0xfa   :  { %518 = vtanh.f32 %v275_v31  ;;  %p568_p12 = pnand %p567_p11, %p561_p8 }
  0xfb   :  { %520 = vtanh.f32 %v274_v33  ;;  %v483_v34 = vpop.f32.mrb[2].mxu1 }
  0xfc   :  { %v277_v35 = vadd.f32 %v483_v34, %v124_v29  ;;  %v253_v36 = vpop.f32.mrb[3].mxu1 }
  0xfd   :  { %v276_v37 = vadd.f32 %v253_v36, %v124_v29  ;;  %v477_v38 = vpop.f32.mrb[2].mxu0 }
  0xfe   :  { %522 = vtanh.f32 %v277_v35  ;;  %v273_v39 = vadd.f32 %v477_v38, %v124_v29  ;;  %v233_v40 = vpop.f32.mrb[3].mxu0 }
  0xff   :  { %v272_v41 = vadd.f32 %v233_v40, %v124_v29  ;;  %v486_v42 = vpop.f32.mrb[4].mxu1 }
 0x100   :  { %524 = vtanh.f32 %v273_v39  ;;  %v279_v43 = vadd.f32 %v486_v42, %v124_v29  ;;  %v263_v44 = vpop.f32.mrb[5].mxu1 }
 0x101   :  { %526 = vtanh.f32 %v272_v41  ;;  %v278_v45 = vadd.f32 %v263_v44, %v124_v29 }
 0x102   :  { %528 = vtanh.f32 %v279_v43 }
 0x103   :  { %530 = vtanh.f32 %v276_v37 }
 0x104   :  { %v519_v47 = vpop.eup %518  ;;  %532 = vtanh.f32 %v278_v45 }
 0x105   :  { %v521_v48 = vpop.eup %520  ;;  %v297_v49 = vmul.f32 %v519_v47, %v432_v46 }
 0x106   :  { %v296_v51 = vmul.f32 %v521_v48, %v432_v46 }
 0x107   :  { %v311_v50 = vsel %vm53_vm2, %v297_v49, 0.0 }
 0x108   :  { %v523_v52 = vpop.eup %522  ;;  %312 = vadd.xlane.f32.xlu1 %v311_v50  ;;  %v308_v55 = vsel %vm53_vm2, %v296_v51, 0.0 }
 0x109   :  { %v299_v57 = vmul.f32 %v523_v52, %v432_v46 }
 0x10a   :  { %v525_v53 = vpop.eup %524 }
 0x10b   :  { %v527_v54 = vpop.eup %526  ;;  %v295_v56 = vmul.f32 %v525_v53, %v432_v46  ;;  %v317_v62 = vsel %vm53_vm2, %v299_v57, 0.0 }
 0x10c   :  { %v529_v58 = vpop.eup %528  ;;  %309 = vadd.xlane.f32.xlu1 %v308_v55  ;;  %v294_v60 = vmul.f32 %v527_v54, %v432_v46 }
 0x10d   :  { %v305_v59 = vsel %vm53_vm2, %v295_v56, 0.0  ;;  %v531_v61 = vpop.eup %530  ;;  %v301_v63 = vmul.f32 %v529_v58, %v432_v46 }
 0x10e   :  { %306 = vadd.xlane.f32.xlu0 %v305_v59  ;;  %v302_v0 = vsel %vm53_vm2, %v294_v60, 0.0  ;;  %v298_v1 = vmul.f32 %v531_v61, %v432_v46  ;;  %v533_v2 = vpop.eup %532 }
 0x10f   :  { %v323_v3 = vsel %vm53_vm2, %v301_v63, 0.0  ;;  %v300_v5 = vmul.f32 %v533_v2, %v432_v46 }
 0x110   :  { %318 = vadd.xlane.f32.xlu1 %v317_v62  ;;  %v314_v4 = vsel %vm53_vm2, %v298_v1, 0.0 }
 0x111   :  { %v320_v6 = vsel %vm53_vm2, %v300_v5, 0.0 }
 0x112   :  { %303 = vadd.xlane.f32.xlu0 %v302_v0 }
 0x114   :  { %324 = vadd.xlane.f32.xlu1 %v323_v3 }
 0x116   :  { %315 = vadd.xlane.f32.xlu0 %v314_v4 }
 0x11a   :  { %321 = vadd.xlane.f32.xlu0 %v320_v6 }
 0x195   :  { %v313_v7 = vpop.xlane.xlu1 %312 }
 0x196   :  { %v353_v19 = vrot.slane %v313_v7, %v340_v13 }
 0x199   :  { %v310_v11 = vpop.xlane.xlu1 %309 }
 0x19a   :  { %v349_v18 = vrot.slane %v310_v11, %v340_v13 }
 0x19b   :  { %v307_v12 = vpop.xlane.xlu0 %306 }
 0x19c   :  { %v345_v15 = vrot.slane %v307_v12, %v340_v13 }
 0x19d   :  { %v319_v16 = vpop.xlane.xlu1 %318 }
 0x19e   :  { %v361_v28 = vrot.slane %v319_v16, %v340_v13 }
 0x19f   :  { %v304_v14 = vpop.xlane.xlu0 %303 }
 0x1a0   :  { %v341_v17 = vrot.slane %v304_v14, %v340_v13 }
 0x1a1   :  { %v325_v25 = vpop.xlane.xlu1 %324 }
 0x1a2   :  { %v371_v20 = vsel %vm370_vm3, %v345_v15, %v341_v17  ;;  %v369_v31 = vrot.slane %v325_v25, %v340_v13 }
 0x1a3   :  { %v373_v21 = vsel %vm372_vm4, %v349_v18, %v371_v20  ;;  %v316_v22 = vpop.xlane.xlu0 %315 }
 0x1a4   :  { %v375_v23 = vsel %vm374_vm5, %v353_v19, %v373_v21  ;;  %v357_v24 = vrot.slane %v316_v22, %v340_v13 }
 0x1a6   :  { %v377_v26 = vsel %vm376_vm6, %v357_v24, %v375_v23 }
 0x1a7   :  { %v322_v29 = vpop.xlane.xlu0 %321  ;;  %v379_v32 = vsel %vm378_vm7, %v361_v28, %v377_v26 }
 0x1a8   :  { %v365_v30 = vrot.slane %v322_v29, %v340_v13 }
 0x1aa   :  { %v381_v33 = vsel %vm380_vm8, %v365_v30, %v379_v32 }
 0x1ab   :  { %v383_v34 = vsel %vm382_vm9, %v369_v31, %v381_v33 }
 0x1ac   :  { %v385_v35 = vsel %vm327_vm10, -1e+12, %v383_v34 }
 0x1ad   :  { %v387_v36 = vsel %vm386_vm11, %v385_v35, -inf }
 0x1ae   :  { %v388_v37 = vrot.slane %v387_v36, 4 }
 0x1b0   :  { %v389_v38 = vmax.f32 %v387_v36, %v388_v37 }
 0x1b2   :  { %v390_v39 = vrot.slane %v389_v38, 2 }
 0x1b4   :  { %v391_v40 = vmax.f32 %v389_v38, %v390_v39 }
 0x1b6   :  { %v392_v41 = vrot.slane %v391_v40, 1 }
 0x1b8   :  { %v393_v42 = vmax.f32 %v391_v40, %v392_v41 }
 0x1ba   :  { %v394_v43 = vsub.f32 %v385_v35, %v393_v42 }
 0x1bc   :  { %v395_v44 = vmul.f32 1.442695, %v394_v43 }
 0x1be   :  { %534 = vpow2.f32 %v395_v44 }
 0x1c8   :  { %v535_v45 = vpop.eup %534 }
 0x1c9   :  { %v397_v46 = vsel %vm386_vm11, %v535_v45, 0.0 }
 0x1ca   :  { %v398_v47 = vrot.slane %v397_v46, 4 }
 0x1cc   :  { %v399_v48 = vadd.f32 %v398_v47, %v397_v46 }
 0x1ce   :  { %v400_v49 = vrot.slane %v399_v48, 2 }
 0x1d0   :  { %v401_v50 = vadd.f32 %v400_v49, %v399_v48 }
 0x1d2   :  { %v402_v51 = vrot.slane %v401_v50, 1 }
 0x1d4   :  { %v403_v52 = vadd.f32 %v402_v51, %v401_v50 }
 0x1d6   :  { %536 = vrcp.f32 %v403_v52 }
 0x1e0   :  { %v537_v53 = vpop.eup %536 }
 0x1e1   :  { %v405_v54 = vmul.f32 %v537_v53, %v535_v45 }
 0x1e3   :  { %406 = vst.msk [vmem:[#allocation5] sm:$0xff] %vm386_vm11, %v405_v54 }
 0x1e4   :  { %571 = shalt.err (!%p568_p12)
}
 0x1e5   :  { %s572_s25 = scalar_lea.hbm %s738_s7, 128 }
 0x1e6   :  { %p573_p13 = scmp.ne.s32.totalorder %s738_s7, %s572_s25  ;;  %p576_p0 = scmp.lt.u32.totalorder %s572_s25, %s738_s7 }
 0x1e8   :  { %p578_p1 = pnand %p576_p0, %p573_p13 }
 0x1ea   :  { %581 = shalt.err (!%p578_p1)
}
 0x1eb   :  { %416 = dma.vmem_to_hbm [thread:$0]  %s414_s21, 128, %s738_s7, [#allocation4]  }
 0x1ec   :  { %584 = dma.done.wait [#allocation4], 128  }
 0x1ed   :  { %585 = vsyncadd [#allocation4], 4294967168 }
 0x1ee   :  { %420 = vsyncpa [#allocation3], 1 }
 0x1ef   :  { %421 = vsyncpa [#allocation4], 1 }

</bundles_post_ra>
